<compile_context>
chip_gen: v5e
topology: v5e:2x2
jax: 0.10.0
libtpu: 0.0.40
codegen_flags: <defaults>
</compile_context>

<pallas_src>
import jax
import jax.numpy as jnp
from jax.experimental import pallas as pl
from jax.experimental.pallas import tpu as pltpu


def _round_up(x: int, m: int) -> int:
    return ((x + m - 1) // m) * m


def _lr_kernel(x_ref, w_ref, b_ref, ot_ref):
    """out_t[n_tasks, TM] = W[n_tasks, K] @ x[TM, K].T + b[n_tasks, 1]."""
    acc = jnp.dot(
        w_ref[...],            # (n_tasks, K)
        x_ref[...].T,          # (K, TM)  -- VMEM-local transpose, hidden under DMA
        preferred_element_type=jnp.float32,
    )                          # (n_tasks, TM)
    ot_ref[...] = (acc + b_ref[...]).astype(ot_ref.dtype)


def lr_forward(x, weight, bias, *, tile_m: int = 1024):
    """Pallas LR forward.

    x:      [batch, n_features] float32
    weight: [n_tasks, n_features] float32  (torch nn.Linear layout)
    bias:   [n_tasks] float32
    returns [batch, n_tasks] float32
    """
    batch, n_features = x.shape
    n_tasks = weight.shape[0]

    # Tile size: multiple of 8 sublanes, capped by (row-aligned) batch.
    tm = min(tile_m, _round_up(batch, 8))
    padded = _round_up(batch, tm)
    if padded != batch:
        x = jnp.pad(x, ((0, padded - batch), (0, 0)))
    grid = (padded // tm,)

    b2d = bias.reshape(n_tasks, 1)  # broadcast over the lane (batch) axis

    flops = 2 * padded * n_features * n_tasks
    bytes_accessed = 4 * (
        padded * n_features + n_tasks * n_features + n_tasks + n_tasks * padded
    )

    out_t = pl.pallas_call(
        _lr_kernel,
        out_shape=jax.ShapeDtypeStruct((n_tasks, padded), x.dtype),
        grid_spec=pltpu.PrefetchScalarGridSpec(
            num_scalar_prefetch=0,
            grid=grid,
            in_specs=[
                # x: streamed batch tiles.
                pl.BlockSpec((tm, n_features), lambda i: (i, 0)),
                # weight: single resident block.
                pl.BlockSpec((n_tasks, n_features), lambda i: (0, 0)),
                # bias: single resident block.
                pl.BlockSpec((n_tasks, 1), lambda i: (0, 0)),
            ],
            # Transposed, lane-dense output: batch on the lane axis.
            out_specs=pl.BlockSpec((n_tasks, tm), lambda i: (0, i)),
        ),
        compiler_params=pltpu.CompilerParams(
            dimension_semantics=("parallel",),
        ),
        cost_estimate=pl.CostEstimate(
            flops=flops, transcendentals=0, bytes_accessed=bytes_accessed
        ),
    )(x, weight, b2d)

    # Back to [batch, n_tasks]; the transposed array is tiny vs x traffic.
    return out_t.T[:batch]


if __name__ == "__main__":
    # Shapes consistent with LR(n_features=32, n_tasks=8).
    n_features, n_tasks = 32, 8
    batch_small = 8

    key = jax.random.PRNGKey(0)
    kx, kw, kb, kx2 = jax.random.split(key, 4)

    # Deterministic params mirroring nn.Linear default init:
    # U(-1/sqrt(n_features), 1/sqrt(n_features)).
    bound = 1.0 / jnp.sqrt(jnp.float32(n_features))
    weight = jax.random.uniform(
        kw, (n_tasks, n_features), jnp.float32, minval=-bound, maxval=bound
    )
    bias = jax.random.uniform(
        kb, (n_tasks,), jnp.float32, minval=-bound, maxval=bound
    )

    # --- tiny shape (single-block path) ---
    x = jax.random.normal(kx, (batch_small, n_features), jnp.float32)
    out = jax.block_until_ready(lr_forward(x, weight, bias))
    ref = x @ weight.T + bias
    assert out.shape == (batch_small, n_tasks)
    assert jnp.allclose(out, ref, atol=1e-5, rtol=1e-5)

    # --- realistic batch (tiled + padded path, non-multiple of the tile) ---
    batch_big = 3000
    x_big = jax.random.normal(kx2, (batch_big, n_features), jnp.float32)
    out_big = jax.block_until_ready(lr_forward(x_big, weight, bias))
    ref_big = x_big @ weight.T + bias
    assert out_big.shape == (batch_big, n_tasks)
    assert jnp.allclose(out_big, ref_big, atol=1e-5, rtol=1e-5)

    # TODO(synk): compute_loss (MSELoss) and evaluate() metrics (R2/adj-R2)
    # are training/eval utilities outside forward(); not implemented here.
    print("KERNEL_OK")
</pallas_src>

<mosaic_0001>
module attributes {stable_mosaic.version = 11 : i64} {
  func.func @_lr_kernel(%arg0: i32, %arg1: memref<8x32xf32, #tpu.memory_space<vmem>>, %arg2: memref<8x32xf32, #tpu.memory_space<vmem>>, %arg3: memref<8x1xf32, #tpu.memory_space<vmem>>, %arg4: memref<8x8xf32, #tpu.memory_space<vmem>>) attributes {dimension_semantics = [#tpu.dimension_semantics<parallel>], iteration_bounds = array<i64: 1>, scalar_prefetch = 0 : i64, scratch_operands = 0 : i64, tpu.core_type = #tpu.core_type<tc>, window_params = [{transform_indices = @transform_0, window_bounds = array<i64: 8, 32>}, {pipeline_mode = #tpu.pipeline_mode<synchronous>, transform_indices = @transform_1, window_bounds = array<i64: 8, 32>}, {pipeline_mode = #tpu.pipeline_mode<synchronous>, transform_indices = @transform_2, window_bounds = array<i64: 8, 1>}, {transform_indices = @transform_3, window_bounds = array<i64: 8, 8>}]} {
    %c0 = arith.constant 0 : index
    %c0_0 = arith.constant 0 : index
    %0 = vector.load %arg2[%c0, %c0_0] : memref<8x32xf32, #tpu.memory_space<vmem>>, vector<8x32xf32>
    %c0_1 = arith.constant 0 : index
    %c0_2 = arith.constant 0 : index
    %1 = vector.load %arg1[%c0_1, %c0_2] : memref<8x32xf32, #tpu.memory_space<vmem>>, vector<8x32xf32>
    %2 = tpu.transpose %1, [1, 0] : vector<8x32xf32> -> vector<32x8xf32>
    %cst = arith.constant dense<0.000000e+00> : vector<8x8xf32>
    %3 = tpu.matmul %0, %2, %cst {dimension_numbers = #tpu.dot_dimension_numbers<[1], [0], [0], [1], [0, 0, 1, 1], [], []>} : vector<8x32xf32>, vector<32x8xf32>, vector<8x8xf32> -> vector<8x8xf32>
    %c0_3 = arith.constant 0 : index
    %c0_4 = arith.constant 0 : index
    %4 = vector.load %arg3[%c0_3, %c0_4] : memref<8x1xf32, #tpu.memory_space<vmem>>, vector<8x1xf32>
    %5 = vector.broadcast %4 : vector<8x1xf32> to vector<8x8xf32>
    %6 = arith.addf %3, %5 : vector<8x8xf32>
    %c0_5 = arith.constant 0 : index
    %c0_6 = arith.constant 0 : index
    %7 = vector.load %arg4[%c0_5, %c0_6] : memref<8x8xf32, #tpu.memory_space<vmem>>, vector<8x8xf32>
    tpu.vector_store %arg4[%c0_5, %c0_6], %6 {strides = array<i32>} : memref<8x8xf32, #tpu.memory_space<vmem>>, vector<8x8xf32>,
    return
  }
  func.func @transform_0(%arg0: i32) -> (i32, i32) {
    %c0_i32 = arith.constant 0 : i32
    %c0_i32_0 = arith.constant 0 : i32
    return %arg0, %c0_i32 : i32, i32
  }
  func.func @transform_1(%arg0: i32) -> (i32, i32) {
    %c0_i32 = arith.constant 0 : i32
    %c0_i32_0 = arith.constant 0 : i32
    %c0_i32_1 = arith.constant 0 : i32
    return %c0_i32, %c0_i32_0 : i32, i32
  }
  func.func @transform_2(%arg0: i32) -> (i32, i32) {
    %c0_i32 = arith.constant 0 : i32
    %c0_i32_0 = arith.constant 0 : i32
    %c0_i32_1 = arith.constant 0 : i32
    return %c0_i32, %c0_i32_0 : i32, i32
  }
  func.func @transform_3(%arg0: i32) -> (i32, i32) {
    %c0_i32 = arith.constant 0 : i32
    %c0_i32_0 = arith.constant 0 : i32
    return %c0_i32, %arg0 : i32, i32
  }
}

</mosaic_0001>

<bundles_post_ra>
// kernel: tpu_custom_call.1
= control target key start
LH: loop header
LB: loop body
LE: loop exit
PB: predicated region body
PF: predicated region fallthrough
CT: control target
= control target key end

     0   :  { %8 = vsyncpa [#allocation3], 0  ;;  %s176_s0 = inlined_call_operand.vmem [shape: f32[8,32], index: 0, kind: input, shape index: {}]   ;;  %s177_s1 = inlined_call_operand.hbm [shape: f32[8,32], index: 1, kind: input, shape index: {}]   ;;  %s178_s2 = inlined_call_operand.vmem [shape: f32[8,1], index: 2, kind: input, shape index: {}]   ;;  %s179_s3 = inlined_call_operand.hbm [shape: f32[8,8], index: 3, kind: output, shape index: {}]  }
   0x1   :  { %9 = vsyncpa [#allocation4], 0  ;;  %s17_s14 = sshll.u32 %s177_s1, 4  ;;  %s141_s15 = smov [#allocation2]   ;;  %s18_s14 = int_to_ptr.hbm [resolvable:$true] %s17_s14 }
   0x2   :  { %s19_s16 = sshll.u32 %s141_s15, 4  ;;  %s20_s16 = int_to_ptr.vmem [resolvable:$true] %s19_s16 }
   0x3   :  { %22 = dma.hbm_to_vmem [thread:$0]  %s18_s14, 128, %s20_s16, [#allocation3]  }
   0x4   :  { %137 = dma.done.wait [#allocation3], 128  }
   0x5   :  { %138 = vsyncadd [#allocation3], 4294967168  ;;  %v142_v0 = vmov 0   ;;  %vm37_vm0 = vcmask 261120   ;;  %v30_v1 = vld [vmem:[%s176_s0] sm:$0xff]  ;;  %s143_s1 = smov [#allocation5]  }
   0x6   :  { %88 = vset.pattern.permute.xlu0 %v142_v0  ;;  %v31_v2 = vld [vmem:[%s178_s2] sm:$0xff]  ;;  %83 = vmatpush.xpose.msk.msra.mxu0 %vm37_vm0, %v30_v1  ;;  %s71_s21 = sshll.u32 %s143_s1, 4  ;;  %s73_s24 = sshll.u32 %s179_s3, 4  ;;  %vm64_vm1 = vcmask 64512   ;;  %s72_s21 = int_to_ptr.vmem [resolvable:$true] %s71_s21  ;;  %s74_s24 = int_to_ptr.hbm [resolvable:$true] %s73_s24 }
   0x7   :  { %v29_v3 = vld [vmem:[#allocation2] sm:$0xff]  ;;  %34 = vperm.xlu0 %88, %v31_v2  }
   0x9   :  { %84 = vmatmul.msk.f32.vlgmr.msra.gmra.mxu0 %vm37_vm0, %v29_v3 }
  0x79   :  { %v35_v4 = vpop.permute.xlu0 %34 }
  0x86   :  { %v61_v5 = vpop.f32.mrf.mxu0 }
  0x87   :  { %v62_v6 = vadd.f32 %v61_v5, %v35_v4 }
  0x89   :  { %65 = vst.msk [vmem:[#allocation5] sm:$0xff] %vm64_vm1, %v62_v6 }
  0x8a   :  { %76 = dma.vmem_to_hbm [thread:$0]  %s72_s21, 128, %s74_s24, [#allocation4]  }
  0x8b   :  { %139 = dma.done.wait [#allocation4], 128  }
  0x8c   :  { %140 = vsyncadd [#allocation4], 4294967168 }
  0x8d   :  { %81 = vsyncpa [#allocation3], 1 }
  0x8e   :  { %82 = vsyncpa [#allocation4], 1 }

</bundles_post_ra>
